<compile_context>
chip_gen: v7x
topology: tpu7x:2x2x1
jax: 0.10.0
libtpu: 0.0.40
codegen_flags: <defaults>
</compile_context>

<pallas_src>
import functools

import jax
import jax.numpy as jnp
from jax.experimental import pallas as pl
from jax.experimental.pallas import tpu as pltpu


def _round_up(x, m):
    return ((x + m - 1) // m) * m


def _kl_div_kernel(logp_ref, target_ref, part_ref, *,
                   batch, classes, tile_b, tile_c,
                   row_tiles_per_core, need_row_mask, need_col_mask):
    core = pl.program_id(0)   # parallel axis (megacore on v7x)
    i = pl.program_id(1)      # row-tile axis (reduction)
    j = pl.program_id(2)      # class-tile axis (reduction)

    @pl.when(jnp.logical_and(i == 0, j == 0))
    def _init():
        part_ref[...] = jnp.zeros_like(part_ref)

    # Upcast immediately so all math/accumulation is f32 (required on v5e,
    # and halves HBM bytes when callers pass bf16 activations).
    x = logp_ref[...].astype(jnp.float32)      # log-probabilities tile
    t = target_ref[...].astype(jnp.float32)    # target probabilities tile

    # Pointwise KL term with xlogy semantics: 0 wherever target == 0.
    pos = t > 0.0
    safe_t = jnp.where(pos, t, 1.0)
    term = jnp.where(pos, t * (jnp.log(safe_t) - x), 0.0)

    # Mask padded / duplicated rows (only traced in when padding exists).
    if need_row_mask:
        bt = core * row_tiles_per_core + i   # UNclamped global row-tile index
        row = bt * tile_b + jax.lax.broadcasted_iota(jnp.int32, (tile_b, 1), 0)
        term = jnp.where(row < batch, term, 0.0)
    # Mask the ragged last class tile (only when C % tile_c != 0).
    if need_col_mask:
        col = j * tile_c + jax.lax.broadcasted_iota(jnp.int32, (1, tile_c), 1)
        term = jnp.where(col < classes, term, 0.0)

    # Fold sublane groups into an (8, tile_c) partial: pure VPU adds over
    # 8-row-aligned slices (no XLU cross-lane reduce, no scalar loop-carry).
    partial = term[0:8, :]
    for r in range(1, tile_b // 8):
        partial = partial + term[r * 8:(r + 1) * 8, :]

    part_ref[...] += partial[None]


def kl_div_batchmean(out_exp, true_exp, *,
                     target_block_bytes=2 * 1024 * 1024,
                     max_tile_b=2048, max_tile_c=2048, num_cores=2):
    """Fused Pallas implementation of KLDivLoss(log_target=False, 'batchmean')."""
    assert out_exp.shape == true_exp.shape and out_exp.ndim == 2
    B, C = out_exp.shape
    itemsize = jnp.dtype(out_exp.dtype).itemsize

    # ---- class-axis tiling: full C if it fits, else 128-multiple tiles ----
    tile_c = C if C <= max_tile_c else max_tile_c          # max_tile_c % 128 == 0
    n_col_tiles = -(-C // tile_c)
    need_col_mask = (n_col_tiles * tile_c != C)

    # ---- row-axis tiling sized by bytes (~2 MiB per input block) ----------
    tile_b = target_block_bytes // (itemsize * tile_c)
    tile_b = max(8, (tile_b // 8) * 8)
    tile_b = min(tile_b, max_tile_b, _round_up(B, 8))
    n_row_tiles = -(-B // tile_b)
    row_tiles_per_core = -(-n_row_tiles // num_cores)
    need_row_mask = (num_cores * row_tiles_per_core * tile_b != B)

    grid = (num_cores, row_tiles_per_core, n_col_tiles)

    def in_map(core, i, j):
        # Clamp so overhang tiles (odd tile count split across cores) re-read
        # the last valid block; their contribution is zeroed by the row mask.
        bt = jnp.minimum(core * row_tiles_per_core + i, n_row_tiles - 1)
        return (bt, j)

    kern = functools.partial(
        _kl_div_kernel, batch=B, classes=C, tile_b=tile_b, tile_c=tile_c,
        row_tiles_per_core=row_tiles_per_core,
        need_row_mask=need_row_mask, need_col_mask=need_col_mask)

    partials = pl.pallas_call(
        kern,
        out_shape=jax.ShapeDtypeStruct((num_cores, 8, tile_c), jnp.float32),
        grid=grid,
        in_specs=[pl.BlockSpec((tile_b, tile_c), in_map),
                  pl.BlockSpec((tile_b, tile_c), in_map)],
        # Per-core, lane-dense resident accumulator block.
        out_specs=pl.BlockSpec((1, 8, tile_c), lambda core, i, j: (core, 0, 0)),
        compiler_params=pltpu.CompilerParams(
            dimension_semantics=("parallel", "arbitrary", "arbitrary"),
            vmem_limit_bytes=32 * 1024 * 1024),
    )(out_exp, true_exp)

    # Final tiny cross-lane reduce + batchmean normalization in XLA.
    return jnp.sum(partials) / jnp.float32(B)


def _ref_kl(o, t):
    pos = t > 0.0
    st = jnp.where(pos, t, 1.0)
    return jnp.sum(jnp.where(pos, t * (jnp.log(st) - o), 0.0)) / o.shape[0]


if __name__ == "__main__":
    # Small shapes consistent with the module: a batch of probability
    # distributions (batch=8, classes=128 -> lane-dense last dim).
    B, C = 8, 128
    key = jax.random.PRNGKey(0)
    k1, k2 = jax.random.split(key)

    out_exp = jax.nn.log_softmax(
        jax.random.normal(k1, (B, C), jnp.float32), axis=-1)   # log-probs
    true_exp = jax.nn.softmax(
        jax.random.normal(k2, (B, C), jnp.float32), axis=-1)   # probs

    loss = kl_div_batchmean(out_exp, true_exp)
    jax.block_until_ready(loss)
    assert jnp.allclose(loss, _ref_kl(out_exp, true_exp),
                        rtol=1e-5, atol=1e-6), loss

    # Ragged shapes: exercises the row mask, the clamped 2-way core split and
    # a non-128-multiple class dim.
    B2, C2 = 10, 200
    k3, k4 = jax.random.split(k2)
    o2 = jax.nn.log_softmax(jax.random.normal(k3, (B2, C2), jnp.float32), axis=-1)
    t2 = jax.nn.softmax(jax.random.normal(k4, (B2, C2), jnp.float32), axis=-1)
    l2 = kl_div_batchmean(o2, t2)
    jax.block_until_ready(l2)
    assert jnp.allclose(l2, _ref_kl(o2, t2), rtol=1e-5, atol=1e-6), l2

    print("KERNEL_OK")
</pallas_src>

<mosaic_0001>
module attributes {stable_mosaic.version = 11 : i64} {
  func.func @_kl_div_kernel(%arg0: i32, %arg1: i32, %arg2: i32, %arg3: memref<8x128xf32, #tpu.memory_space<vmem>>, %arg4: memref<8x128xf32, #tpu.memory_space<vmem>>, %arg5: memref<1x8x128xf32, #tpu.memory_space<vmem>>) attributes {dimension_semantics = [#tpu.dimension_semantics<parallel>, #tpu.dimension_semantics<arbitrary>, #tpu.dimension_semantics<arbitrary>], iteration_bounds = array<i64: 2, 1, 1>, scalar_prefetch = 0 : i64, scratch_operands = 0 : i64, tpu.core_type = #tpu.core_type<tc>, window_params = [{transform_indices = @transform_0, window_bounds = array<i64: 8, 128>}, {transform_indices = @transform_1, window_bounds = array<i64: 8, 128>}, {transform_indices = @transform_2, window_bounds = array<i64: 1, 8, 128>}]} {
    %c0_i32 = arith.constant 0 : i32
    %0 = arith.cmpi eq, %arg1, %c0_i32 : i32
    %c0_i32_0 = arith.constant 0 : i32
    %1 = arith.cmpi eq, %arg2, %c0_i32_0 : i32
    %2 = arith.andi %0, %1 : i1
    %3 = arith.extui %2 : i1 to i32
    %c0_i32_1 = arith.constant 0 : i32
    %4 = arith.cmpi ne, %3, %c0_i32_1 : i32
    scf.if %4 {
      %cst_15 = arith.constant 0.000000e+00 : f32
      %32 = vector.broadcast %cst_15 : f32 to vector<1x8x128xf32>
      %c0_16 = arith.constant 0 : index
      %c0_17 = arith.constant 0 : index
      %c0_18 = arith.constant 0 : index
      %33 = vector.load %arg5[%c0_16, %c0_17, %c0_18] : memref<1x8x128xf32, #tpu.memory_space<vmem>>, vector<1x8x128xf32>
      tpu.vector_store %arg5[%c0_16, %c0_17, %c0_18], %32 {strides = array<i32>} : memref<1x8x128xf32, #tpu.memory_space<vmem>>, vector<1x8x128xf32>,
    } else {
    }
    %c0 = arith.constant 0 : index
    %c0_2 = arith.constant 0 : index
    %5 = vector.load %arg3[%c0, %c0_2] : memref<8x128xf32, #tpu.memory_space<vmem>>, vector<8x128xf32>
    %c0_3 = arith.constant 0 : index
    %c0_4 = arith.constant 0 : index
    %6 = vector.load %arg4[%c0_3, %c0_4] : memref<8x128xf32, #tpu.memory_space<vmem>>, vector<8x128xf32>
    %cst = arith.constant 0.000000e+00 : f32
    %7 = vector.broadcast %cst : f32 to vector<8x128xf32>
    %8 = arith.cmpf ogt, %6, %7 : vector<8x128xf32>
    %cst_5 = arith.constant 1.000000e+00 : f32
    %9 = vector.broadcast %cst_5 : f32 to vector<8x128xf32>
    %10 = arith.select %8, %6, %9 : vector<8x128xi1>, vector<8x128xf32>
    %11 = math.log %10 : vector<8x128xf32>
    %12 = arith.subf %11, %5 : vector<8x128xf32>
    %13 = arith.mulf %6, %12 : vector<8x128xf32>
    %cst_6 = arith.constant 0.000000e+00 : f32
    %14 = vector.broadcast %cst_6 : f32 to vector<8x128xf32>
    %15 = arith.select %8, %13, %14 : vector<8x128xi1>, vector<8x128xf32>
    %c1_i32 = arith.constant 1 : i32
    %16 = arith.muli %arg0, %c1_i32 : i32
    %17 = arith.addi %16, %arg1 : i32
    %c8_i32 = arith.constant 8 : i32
    %18 = arith.muli %17, %c8_i32 : i32
    %19 = tpu.iota {dimensions = array<i32: 0>} : vector<8x1xi32>
    %20 = vector.broadcast %18 : i32 to vector<8x1xi32>
    %21 = arith.addi %20, %19 : vector<8x1xi32>
    %c8_i32_7 = arith.constant 8 : i32
    %22 = vector.broadcast %c8_i32_7 : i32 to vector<8x1xi32>
    %23 = arith.cmpi slt, %21, %22 : vector<8x1xi32>
    %cst_8 = arith.constant 0.000000e+00 : f32
    %24 = vector.shape_cast %23 : vector<8x1xi1> to vector<8x1xi1>
    %25 = vector.broadcast %24 : vector<8x1xi1> to vector<8x128xi1>
    %26 = vector.broadcast %cst_8 : f32 to vector<8x128xf32>
    %27 = arith.select %25, %15, %26 : vector<8x128xi1>, vector<8x128xf32>
    %c0_9 = arith.constant 0 : index
    %c0_10 = arith.constant 0 : index
    %c0_11 = arith.constant 0 : index
    %28 = vector.load %arg5[%c0_9, %c0_10, %c0_11] : memref<1x8x128xf32, #tpu.memory_space<vmem>>, vector<1x8x128xf32>
    %29 = vector.shape_cast %27 : vector<8x128xf32> to vector<1x8x128xf32>
    %30 = arith.addf %28, %29 : vector<1x8x128xf32>
    %c0_12 = arith.constant 0 : index
    %c0_13 = arith.constant 0 : index
    %c0_14 = arith.constant 0 : index
    %31 = vector.load %arg5[%c0_12, %c0_13, %c0_14] : memref<1x8x128xf32, #tpu.memory_space<vmem>>, vector<1x8x128xf32>
    tpu.vector_store %arg5[%c0_12, %c0_13, %c0_14], %30 {strides = array<i32>} : memref<1x8x128xf32, #tpu.memory_space<vmem>>, vector<1x8x128xf32>,
    return
  }
  func.func @transform_0(%arg0: i32, %arg1: i32, %arg2: i32) -> (i32, i32) {
    %c1_i32 = arith.constant 1 : i32
    %0 = arith.muli %arg0, %c1_i32 : i32
    %1 = arith.addi %0, %arg1 : i32
    %c0_i32 = arith.constant 0 : i32
    %2 = arith.minsi %1, %c0_i32 : i32
    %c0_i32_0 = arith.constant 0 : i32
    return %2, %arg2 : i32, i32
  }
  func.func @transform_1(%arg0: i32, %arg1: i32, %arg2: i32) -> (i32, i32) {
    %c1_i32 = arith.constant 1 : i32
    %0 = arith.muli %arg0, %c1_i32 : i32
    %1 = arith.addi %0, %arg1 : i32
    %c0_i32 = arith.constant 0 : i32
    %2 = arith.minsi %1, %c0_i32 : i32
    %c0_i32_0 = arith.constant 0 : i32
    return %2, %arg2 : i32, i32
  }
  func.func @transform_2(%arg0: i32, %arg1: i32, %arg2: i32) -> (i32, i32, i32) {
    %c0_i32 = arith.constant 0 : i32
    %c0_i32_0 = arith.constant 0 : i32
    %c0_i32_1 = arith.constant 0 : i32
    return %arg0, %c0_i32, %c0_i32_0 : i32, i32, i32
  }
}

</mosaic_0001>

<bundles_post_ra>
// kernel: tpu_custom_call.1
= control target key start
LH: loop header
LB: loop body
LE: loop exit
PB: predicated region body
PF: predicated region fallthrough
CT: control target
= control target key end

     0   :  { %7 = vsyncpa [#allocation3], 0  ;;  %s896_s0 = inlined_call_operand.hbm [shape: f32[8,128], index: 0, kind: input, shape index: {}]   ;;  %s897_s1 = inlined_call_operand.hbm [shape: f32[8,128], index: 1, kind: input, shape index: {}]   ;;  %s898_s2 = inlined_call_operand.hbm [shape: f32[2,8,128], index: 2, kind: output, shape index: {}]  }
   0x1   :  { %9 = vsyncpa [#allocation3 + $0x1], 0 }
   0x2   :  { %10 = vsyncpa [#allocation6], 0 }
   0x3   :  { %12 = vsyncpa [#allocation6 + $0x1], 0 }
   0x4   :  { %13 = vsyncpa [#allocation4], 0 }
   0x5   :  { %15 = vsyncpa [#allocation4 + $0x1], 0  ;;  %s692_s9 = smov 0   ;;  %s694_s10 = smov 0  }
   0x6   :  { %s696_s11 = smov 0   ;;  %s698_s12 = smov 0  }
   0x7   :  { %s700_s13 = smov 0   ;;  %s702_s14 = smov 0  }
   0x8   :  { %s704_s15 = smov 0   ;;  %s706_s16 = smov 0  }
   0x9 LB: > { %s394_s17 = sadd.s32 4294967295, %s672_s16   ;;  %s395_s18 = sadd.s32 4294967294, %s672_s16   ;;  %s672_s16 = sphi %s706_s16, %s21_s16   ;;  %s668_s15 = sphi %s704_s15, %s919_s15   ;;  %s664_s14 = sphi %s702_s14, %s918_s14   ;;  %s660_s13 = sphi %s700_s13, %s886_s13   ;;  %s656_s12 = sphi %s698_s12, %s917_s12   ;;  %s652_s11 = sphi %s696_s11, %s916_s11   ;;  %s648_s10 = sphi %s694_s10, %s915_s10   ;;  %s644_s9 = sphi %s692_s9, %s914_s9  }
   0xa   : > { %s40_s19 = sadd.s32 1, %s668_s15  ;;  %p641_p1 = scmp.ne.s32.totalorder %s660_s13, 0 }
   0xb   : > { %p42_p0 = scmp.ge.s32.totalorder %s40_s19, 2  ;;  %p63_p2 = scmp.eq.s32.totalorder %s672_s16, 0 }
   0xc   : > { %p68_p3 = scmp.ne.s32.totalorder %s660_s13, %s656_s12  ;;  %p69_p5 = scmp.eq.s32.totalorder %s394_s17, 0 }
   0xd   : > { %s921_s19 = smov (%p42_p0, %s40_s19), 0  ;;  %p738_p4 = por %p641_p1, %p63_p2 }
   0xe   : > { %p742_p6 = por %p69_p5, %p68_p3  ;;  %s112_s22 = ssub.s32 %s668_s15, %s921_s19 }
   0xf   : > { %p113_p7 = scmp.eq.s32.totalorder %s112_s22, 0  ;;  %s115_s23 = sadd.s32 1, %s652_s11 }
  0x10   : > { %s902_s21 = scalar_select %p742_p6, 1, 0 }
  0x11   : > { %s750_s24 = scalar_select %p113_p7, %s652_s11, %s115_s23  }
  0x12   : > { %p125_p8 = scmp.ne.s32.totalorder %s652_s11, %s648_s10  ;;  %p126_p9 = scmp.eq.s32.totalorder %s394_s17, 1 }
  0x13   : > { %p131_p10 = scmp.ne.s32.totalorder %s648_s10, %s644_s9  ;;  %p132_p11 = scmp.eq.s32.totalorder %s395_s18, 1 }
  0x14   : > { %p756_p12 = por %p126_p9, %p125_p8  ;;  %p428_p1 = scmp.lt.s32.totalorder %s672_s16, 2 }
  0x15   : > { %p761_p0 = por %p132_p11, %p131_p10  ;;  %s674_s27 = smov [#allocation2]  }
  0x16   : > { %s903_s25 = scalar_select %p756_p12, 1, 0 }
  0x17   : > { %s904_s26 = scalar_select %p761_p0, 1, 0 }
  0x18   : > { %s167_s28 = sshll.u32 %s674_s27, 4  ;;  %p768_p2 = pnand %p428_p1, %p738_p4  ;;  %s168_s28 = int_to_ptr.vmem [resolvable:$true] %s167_s28 }
  0x19   : > { %s505_s4 = scalar_lea.hbm %s896_s0, 128 }
  0x1a   : > { %p506_p7 = scmp.ne.s32.totalorder %s896_s0, %s505_s4  ;;  %p507_p8 = pneg %p768_p2 }
  0x1b   : > { %p512_p10 = scmp.lt.u32.totalorder %s505_s4, %s505_s4  ;;  %p514_p11 = scmp.lt.u32.totalorder %s505_s4, %s896_s0 }
  0x1c   : > { %p508_p4 = pnand %p507_p8, %p506_p7 }
  0x1d   : > { %p515_p1 = por %p514_p11, %p512_p10 }
  0x1e   : > { %p509_p9 = pneg %p508_p4 }
  0x20   : > { %p516_p13 = pnand %p515_p1, %p509_p9 }
  0x22   : > { %519 = shalt.err (!%p516_p13)
}
  0x23   : > { %s520_s12 = scalar_lea.vmem %s168_s28, 128  ;;  %s527_s17 = scalar_lea.vmem %s168_s28, 256 }
  0x24   : > { %p521_p3 = scmp.ne.s32.totalorder %s168_s28, %s520_s12  ;;  %p528_p12 = scmp.lt.s32.totalorder %s168_s28, %s168_s28 }
  0x25   : > { %p529_p6 = scmp.lt.s32.totalorder %s527_s17, %s520_s12 }
  0x26   : > { %p523_p5 = pnand %p521_p3, %p507_p8 }
  0x27   : > { %p530_p7 = por %p529_p6, %p528_p12 }
  0x28   : > { %p524_p0 = pneg %p523_p5 }
  0x2a   : > { %p531_p4 = pnand %p530_p7, %p524_p0 }
  0x2c   : > { %534 = shalt.err (!%p531_p4)
}
  0x2d   : > { %420 = dma.hbm_to_vmem [thread:$0]  (!%p768_p2), %s896_s0, 128, %s168_s28, [#allocation3]  }
  0x2e   : > { %p906_p13 = scmp.lt.s32.totalorder %s672_s16, 3  ;;  %p907_p9 = scmp.ge.s32.totalorder %s672_s16, 1 }
  0x2f   : > { %s675_s23 = smov [#allocation5]   ;;  %s535_s4 = scalar_lea.hbm %s897_s1, 128 }
  0x30   : > { %p800_p10 = pnand %p907_p9, %p906_p13  ;;  %s189_s27 = sshll.u32 %s675_s23, 4  ;;  %s190_s27 = int_to_ptr.vmem [resolvable:$true] %s189_s27 }
  0x31   : > { %p536_p6 = scmp.ne.s32.totalorder %s897_s1, %s535_s4  ;;  %p542_p3 = scmp.lt.u32.totalorder %s535_s4, %s535_s4 }
  0x32   : > { %s908_s22 = scalar_select %p800_p10, 1, 0 }
  0x33   : > { %p538_p12 = pnand %p536_p6, %p507_p8  ;;  %p544_p5 = scmp.lt.u32.totalorder %s535_s4, %s897_s1 }
  0x35   : > { %p539_p0 = pneg %p538_p12  ;;  %p545_p11 = por %p544_p5, %p542_p3 }
  0x37   : > { %p546_p1 = pnand %p545_p11, %p539_p0 }
  0x39   : > { %549 = shalt.err (!%p546_p1)
}
  0x3a   : > { %s550_s8 = scalar_lea.vmem %s190_s27, 128  ;;  %s557_s12 = scalar_lea.vmem %s190_s27, 256 }
  0x3b   : > { %p551_p7 = scmp.ne.s32.totalorder %s190_s27, %s550_s8  ;;  %p558_p9 = scmp.lt.s32.totalorder %s190_s27, %s190_s27 }
  0x3c   : > { %p559_p10 = scmp.lt.s32.totalorder %s557_s12, %s550_s8 }
  0x3d   : > { %p553_p4 = pnand %p551_p7, %p507_p8 }
  0x3e   : > { %p560_p6 = por %p559_p10, %p558_p9 }
  0x3f   : > { %p554_p13 = pneg %p553_p4 }
  0x41   : > { %p561_p12 = pnand %p560_p6, %p554_p13 }
  0x43   : > { %564 = shalt.err (!%p561_p12)
}
  0x44   : > { %423 = dma.hbm_to_vmem [thread:$0]  (!%p768_p2), %s897_s1, 128, %s190_s27, [#allocation6]  }
  0x45   : > { %p909_p0 = scmp.ne.s32.totalorder %s908_s22, 0 }
  0x46   : > { %s200_s20 = sand.u32 (!%p909_p0), 1, %s660_s13   ;;  %p910_p8 = scmp.ne.s32.totalorder (!%p909_p0), %s902_s21, 0 }
  0x47   : > { %198 = sbr.rel (%p909_p0) target bundleno = 117 (0x75), region = 28  ;;  %s403_s23 = sshll.u32 (!%p909_p0), %s200_s20, 3 }
  0x48   : > { %s201_s30 = scalar_lea.sflag (!%p909_p0), [#allocation3], %s200_s20  ;;  %s204_s3 = scalar_lea.vmem (!%p909_p0), [#allocation2], %s403_s23 }
  0x4e   : > { %630 = dma.done.wait (%p910_p8), %s201_s30, 128  }
  0x4f   : > { %632 = vsyncadd (%p910_p8), %s201_s30, 4294967168  ;;  %s210_s29 = scalar_lea.sflag [#allocation6], %s200_s20  ;;  %s213_s4 = scalar_lea.vmem [#allocation5], %s403_s23 }
  0x50   : > { %634 = dma.done.wait (%p910_p8), %s210_s29, 128  }
  0x51   : > { %636 = vsyncadd (%p910_p8), %s210_s29, 4294967168  ;;  %v253_v0 = vld [vmem:[%s213_s4] sm:$0xff]  ;;  %v263_v2 = vlaneseq  ;;  %s406_s22 = sshll.u32 %s664_s14, 3  ;;  %s236_s27 = sand.u32 1, %s648_s10   ;;  %v252_v6 = vld [vmem:[%s204_s3] sm:$0xff] }
  0x52   : > { %vm254_vm0 = vcmp.gt.f32.partialorder %v253_v0, 0.0  ;;  %v265_v4 = vstv %s406_s22  ;;  %s405_s5 = sshll.u32 %s236_s27, 3  ;;  %s408_s21 = sshll.u32 %s664_s14, 7 }
  0x53   : > { %v255_v1 = vsel %vm254_vm0, %v253_v0, 1.0  ;;  %v264_v3 = vshrl.u32 %v263_v2, 7  ;;  %s238_s6 = scalar_lea.vmem [#allocation7], %s405_s5  ;;  %s843_s12 = scalar_lea.hbm %s898_s2, %s408_s21 }
  0x54   : > { %503 = vlog2.f32 %v255_v1  ;;  %s288_s28 = sshll.u32 %s238_s6, 4  ;;  %s275_s17 = scalar_lea.sflag [#allocation4], %s236_s27  ;;  %s845_s28 = int_to_ptr.vmem [resolvable:$true] %s288_s28 }
  0x55   : > { %v266_v8 = vadd.s32 %v265_v4, %v264_v3  ;;  %s565_s18 = scalar_lea.vmem %s845_s28, 128  ;;  %p911_p10 = scmp.ne.s32.totalorder %s903_s25, 0 }
  0x56   : > { %p566_p2 = scmp.ne.s32.totalorder %s845_s28, %s565_s18  ;;  %s676_s14 = smov [#allocation7]  }
  0x57   : > { %vm267_vm1 = vcmp.lt.s32.totalorder %v266_v8, 8  ;;  %s569_s20 = sshll.u32 %s676_s14, 4  ;;  %s570_s20 = int_to_ptr.vmem [resolvable:$false] %s569_s20 }
  0x58   : > { %p567_p3 = pnand %p566_p2, %p911_p10  ;;  %s571_s23 = scalar_lea.vmem %s570_s20, 256 }
  0x59   : > { %p572_p11 = scmp.lt.s32.totalorder %s845_s28, %s570_s20  ;;  %p573_p1 = scmp.lt.s32.totalorder %s571_s23, %s565_s18 }
  0x5a   : > { %p568_p5 = pneg %p567_p3 }
  0x5b   : > { %p574_p7 = por %p573_p1, %p572_p11 }
  0x5d   : > { %p575_p4 = pnand %p574_p7, %p568_p5 }
  0x5e   : > { %v504_v5 = vpop.eup %503 }
  0x5f   : > { %v257_v7 = vmul.f32 0.6931472, %v504_v5 }
  0x61   : > { %v258_v9 = vsub.f32 %v257_v7, %v252_v6 }
  0x63   : > { %v259_v10 = vmul.f32 %v258_v9, %v253_v0 }
  0x65   : > { %v260_v11 = vsel %vm254_vm0, %v259_v10, 0.0 }
  0x66   : > { %v270_v12 = vsel %vm267_vm1, %v260_v11, 0.0 }
  0x67   : > { %273 = vst [vmem:[%s238_s6] sm:$0xff] %v270_v12 }
  0x68   : > { %578 = shalt.err (!%p575_p4)
}
  0x69   : > { %s579_s30 = scalar_lea.hbm %s843_s12, 128  ;;  %s583_s4 = scalar_lea.hbm %s898_s2, 256 }
  0x6a   : > { %p580_p13 = scmp.ne.s32.totalorder %s843_s12, %s579_s30  ;;  %p584_p12 = scmp.lt.u32.totalorder %s843_s12, %s898_s2 }
  0x6b   : > { %p585_p0 = scmp.lt.u32.totalorder %s583_s4, %s579_s30  ;;  %p587_p2 = scmp.lt.u32.totalorder %s579_s30, %s843_s12 }
  0x6c   : > { %p581_p9 = pnand %p580_p13, %p911_p10 }
  0x6d   : > { %p586_p8 = por %p585_p0, %p584_p12 }
  0x6e   : > { %p582_p6 = pneg %p581_p9 }
  0x6f   : > { %p588_p3 = por %p587_p2, %p586_p8 }
  0x71   : > { %p589_p5 = pnand %p588_p3, %p582_p6 }
  0x73   : > { %592 = shalt.err (!%p589_p5)
}
  0x74   : > { %415 = dma.vmem_to_hbm [thread:$0]  (%p911_p10), %s845_s28, 128, %s843_s12, %s275_s17  }
  0x75 PF: > { %s300_s5 = sand.u32 1, %s644_s9   ;;  %p912_p11 = scmp.ne.s32.totalorder %s904_s26, 0 }
  0x76   : > { %p913_p1 = scmp.ge.s32.totalorder %s672_s16, 2  ;;  %s301_s21 = scalar_lea.sflag [#allocation4], %s300_s5 }
  0x78   : > { %p425_p7 = pnand %p913_p1, %p912_p11 }
  0x7a   : > { %638 = dma.done.wait (!%p425_p7), %s301_s21, 128  }
  0x7b   : > { %640 = vsyncadd (!%p425_p7), %s301_s21, 4294967168  ;;  %s21_s16 = sadd.s32 1, %s672_s16   ;;  %s914_s9 = smov %s648_s10 }
  0x7c   : > { %p18_p4 = scmp.ge.s32.totalorder %s21_s16, 4   ;;  %s915_s10 = smov %s652_s11 }
  0x7d   : > { %s916_s11 = smov %s750_s24  ;;  %s917_s12 = smov %s660_s13 }
  0x7e   : > { %s886_s13 = smov 0   ;;  %s918_s14 = smov %s668_s15 }
  0x7f   : > { %s919_s15 = smov %s921_s19  ;;  %20 = sbr.rel (!%p18_p4) target bundleno = 9 (0x9), region = 90 }
  0x86   :  { %306 = vsyncpa [#allocation3], 1 }
  0x87   :  { %308 = vsyncpa [#allocation3 + $0x1], 1 }
  0x88   :  { %309 = vsyncpa [#allocation6], 1 }
  0x89   :  { %311 = vsyncpa [#allocation6 + $0x1], 1 }
  0x8a   :  { %312 = vsyncpa [#allocation4], 1 }
  0x8b   :  { %314 = vsyncpa [#allocation4 + $0x1], 1 }

</bundles_post_ra>
